<compile_context>
chip_gen: v7x
topology: tpu7x:2x2x1
jax: 0.10.0
libtpu: 0.0.40
codegen_flags: <defaults>
</compile_context>

<pallas_src>
import jax
import jax.numpy as jnp
from jax.experimental import pallas as pl
from jax.experimental.pallas import tpu as pltpu
from typing import NamedTuple


def _round_up(x, m):
    return (x + m - 1) // m * m


def _tpu_generation():
    """Best-effort TPU generation (5 / 6 / 7) from the device kind; defaults to 6."""
    try:
        kind = jax.devices()[0].device_kind.lower()
    except Exception:
        return 6
    for gen in (7, 6, 5):
        if f"v{gen}" in kind or f"tpu{gen}" in kind:
            return gen
    return 6


def _gen_config(gen):
    """Per-generation roofline-sized output-tile targets and VMEM ceilings."""
    if gen >= 7:
        # v7x: 64 MiB physical VMEM per TC -> cap well below it (Mosaic scratch headroom).
        return dict(tgt_m=1024, tgt_n=1024, vmem_cap=48 * 1024 * 1024, bf16_default=True)
    if gen == 6:
        # v6e: 128 MiB physical VMEM, ~650-700 FLOP/B needed -> ~2048x1024 output tile.
        return dict(tgt_m=2048, tgt_n=1024, vmem_cap=104 * 1024 * 1024, bf16_default=True)
    # v5e (and older / unknown as conservative fallback targets): single TC.
    return dict(tgt_m=512, tgt_n=512, vmem_cap=100 * 1024 * 1024, bf16_default=False)


# ----------------------------- kernels --------------------------------------


def _linear_relu_kernel(x_ref, w_ref, b_ref, o_ref):
    """Single-K-tile variant (2-D grid): one MXU dot per output tile, fused bias+ReLU."""
    y = jnp.dot(x_ref[...], w_ref[...], preferred_element_type=jnp.float32)
    o_ref[...] = jnp.maximum(y + b_ref[...], 0.0).astype(o_ref.dtype)


def _linear_relu_acc_kernel(x_ref, w_ref, b_ref, o_ref, acc_ref):
    """K-tiled variant (3-D grid): f32 VMEM accumulator over the innermost K axis."""
    k = pl.program_id(2)

    @pl.when(k == 0)
    def _init():
        acc_ref[...] = jnp.zeros_like(acc_ref)

    acc_ref[...] += jnp.dot(
        x_ref[...], w_ref[...], preferred_element_type=jnp.float32
    )

    @pl.when(k == pl.num_programs(2) - 1)
    def _epilogue():
        y = acc_ref[...] + b_ref[...]          # f32 bias add, broadcast over rows
        o_ref[...] = jnp.maximum(y, 0.0).astype(o_ref.dtype)


# ----------------------------- wrappers -------------------------------------


class PreparedParams(NamedTuple):
    w_p: jax.Array          # [K_pp, N_pp], zero-padded and cast to compute dtype
    b_p: jax.Array          # [1, N_pp] float32
    n_out: int              # original out_features
    k_in: int               # original in_features
    tile_n: int
    tile_k: int
    compute_dtype: jnp.dtype


def prepare_weights(w, b, *, compute_dtype=None, tile_n=None, tile_k=None,
                    generation=None):
    """Pad + cast the persistent nn.Linear parameters once, outside the hot path.

    w: [in_features, out_features] (transpose of the PyTorch weight), b: [out_features].
    """
    K, N = w.shape
    assert b.shape == (N,)
    gen = _tpu_generation() if generation is None else generation
    cfg = _gen_config(gen)

    if compute_dtype is None:
        # bf16 MXU inputs on v6e/v7x (f32 accumulation preserved in the kernel).
        compute_dtype = (jnp.bfloat16
                         if (cfg["bf16_default"] and jnp.dtype(w.dtype) == jnp.float32)
                         else w.dtype)
    cdt = jnp.dtype(compute_dtype)

    # Lane-dense padding on both feature axes.
    K_p = _round_up(K, 128)
    N_p = _round_up(N, 128)

    if tile_n is None:
        tile_n = min(cfg["tgt_n"], N_p)
    tile_n = min(_round_up(tile_n, 128), _round_up(N_p, 128))

    if tile_k is None:
        # Collapse the K grid axis entirely when the full contraction fits a tile.
        tile_k = K_p if K_p <= 4096 else 2048
    tile_k = min(_round_up(tile_k, 128), K_p)

    # Keep the double-buffered weight stream within roughly half the VMEM budget.
    budget = int(0.85 * cfg["vmem_cap"])
    while 2 * tile_k * tile_n * cdt.itemsize > budget // 2:
        if tile_k > 512:
            tile_k //= 2
        elif tile_n > 128:
            tile_n //= 2
        else:
            break

    N_pp = _round_up(N_p, tile_n)
    K_pp = _round_up(K_p, tile_k)

    w_p = w
    if (K_pp, N_pp) != (K, N):
        w_p = jnp.pad(w, ((0, K_pp - K), (0, N_pp - N)))
    w_p = w_p.astype(cdt)

    b_p = b.astype(jnp.float32).reshape(1, N)
    if N_pp != N:
        b_p = jnp.pad(b_p, ((0, 0), (0, N_pp - N)))

    return PreparedParams(w_p, b_p, N, K, int(tile_n), int(tile_k), cdt)


def linear_block_prepared(x, params: PreparedParams, *, tile_m=None, out_dtype=None):
    """relu(x @ W + b) with pre-padded / pre-cast weights (the hot path)."""
    M, K = x.shape
    assert K == params.k_in
    K_pp, N_pp = params.w_p.shape
    tile_n, tile_k = params.tile_n, params.tile_k
    cdt = params.compute_dtype
    out_dtype = jnp.dtype(out_dtype) if out_dtype is not None else x.dtype

    cfg = _gen_config(_tpu_generation())
    itemsize = cdt.itemsize
    out_itemsize = jnp.dtype(out_dtype).itemsize
    sublane = {1: 32, 2: 16, 4: 8}.get(itemsize, 8)

    # No M-halving "megacore" heuristic: tile_m = min(target, M) (single TC on v5e/v6e).
    M_aligned = _round_up(M, sublane)
    if tile_m is None:
        tile_m = min(cfg["tgt_m"], M_aligned)
    tile_m = _round_up(min(tile_m, M_aligned), sublane)

    single_k = tile_k >= K_pp

    def footprint(tm):
        f = (2 * tm * tile_k * itemsize          # x tiles (double-buffered)
             + 2 * tile_k * tile_n * itemsize    # w tiles
             + 2 * tile_n * 4                    # bias tiles
             + 2 * tm * tile_n * out_itemsize)   # out tiles
        if not single_k:
            f += tm * tile_n * 4                 # f32 accumulator scratch
        return f

    budget = int(0.85 * cfg["vmem_cap"])
    while footprint(tile_m) > budget and tile_m > sublane:
        tile_m = _round_up(tile_m // 2, sublane)

    M_p = _round_up(M, tile_m)

    # Only the activation is padded/cast per call; weights were prepared once.
    x_p = x
    if (M_p, K_pp) != (M, K):
        x_p = jnp.pad(x, ((0, M_p - M), (0, K_pp - K)))
    x_p = x_p.astype(cdt)

    vmem_limit = int(min(cfg["vmem_cap"],
                         max(32 * 1024 * 1024, int(1.5 * footprint(tile_m)))))

    if single_k:
        # 2-D grid: no K axis, no accumulator, no pl.when branches.
        grid = (M_p // tile_m, N_pp // tile_n)
        out = pl.pallas_call(
            _linear_relu_kernel,
            out_shape=jax.ShapeDtypeStruct((M_p, N_pp), out_dtype),
            grid_spec=pltpu.PrefetchScalarGridSpec(
                num_scalar_prefetch=0,
                grid=grid,
                in_specs=[
                    pl.BlockSpec((tile_m, tile_k), lambda i, j: (i, 0)),   # x tile
                    pl.BlockSpec((tile_k, tile_n), lambda i, j: (0, j)),   # w tile
                    pl.BlockSpec((1, tile_n), lambda i, j: (0, j)),        # bias tile
                ],
                out_specs=pl.BlockSpec((tile_m, tile_n), lambda i, j: (i, j)),
            ),
            compiler_params=pltpu.CompilerParams(
                # TODO(synk): on v7x, pltpu.CORE_PARALLEL on the N (j) axis would shard
                # W reads disjointly across the two TensorCores; kept portable here.
                dimension_semantics=("parallel", "parallel"),
                vmem_limit_bytes=vmem_limit,
            ),
        )(x_p, params.w_p, params.b_p)
    else:
        # 3-D grid: reduction axis last ("arbitrary"), f32 VMEM accumulator.
        grid = (M_p // tile_m, N_pp // tile_n, K_pp // tile_k)
        out = pl.pallas_call(
            _linear_relu_acc_kernel,
            out_shape=jax.ShapeDtypeStruct((M_p, N_pp), out_dtype),
            grid_spec=pltpu.PrefetchScalarGridSpec(
                num_scalar_prefetch=0,
                grid=grid,
                in_specs=[
                    pl.BlockSpec((tile_m, tile_k), lambda i, j, k: (i, k)),  # x tile
                    pl.BlockSpec((tile_k, tile_n), lambda i, j, k: (k, j)),  # w tile
                    pl.BlockSpec((1, tile_n), lambda i, j, k: (0, j)),       # bias tile
                ],
                out_specs=pl.BlockSpec((tile_m, tile_n), lambda i, j, k: (i, j)),
                scratch_shapes=[pltpu.VMEM((tile_m, tile_n), jnp.float32)],
            ),
            compiler_params=pltpu.CompilerParams(
                dimension_semantics=("parallel", "parallel", "arbitrary"),
                vmem_limit_bytes=vmem_limit,
            ),
        )(x_p, params.w_p, params.b_p)

    return out[:M, :params.n_out]


def linear_block(x, w, b, *, compute_dtype=None, out_dtype=None,
                 tile_m=None, tile_n=None, tile_k=None):
    """relu(x @ w + b). Convenience wrapper: in a real model call prepare_weights()
    once and reuse the PreparedParams across steps (hoists W pad+cast off the hot path)."""
    params = prepare_weights(w, b, compute_dtype=compute_dtype,
                             tile_n=tile_n, tile_k=tile_k)
    return linear_block_prepared(x, params, tile_m=tile_m, out_dtype=out_dtype)


if __name__ == "__main__":
    key = jax.random.PRNGKey(0)

    # --- small shape matching LinearBlock(fcn=32) on a batch of 16 rows ---
    batch, fcn = 16, 32
    kx, kw, kb = jax.random.split(key, 3)
    x = jax.random.normal(kx, (batch, fcn), dtype=jnp.float32)

    # Deterministic init mirroring nn.Linear defaults: U(-1/sqrt(fcn), 1/sqrt(fcn)).
    bound = 1.0 / (fcn ** 0.5)
    # PyTorch weight is [out, in]; we store its transpose [in, out] for x @ W.
    w = jax.random.uniform(kw, (fcn, fcn), minval=-bound, maxval=bound, dtype=jnp.float32)
    b = jax.random.uniform(kb, (fcn,), minval=-bound, maxval=bound, dtype=jnp.float32)

    y_ref = jnp.maximum(x @ w + b, 0.0)

    # Exact f32 path with pre-prepared (pad/cast hoisted) weights — single-K kernel.
    params_f32 = prepare_weights(w, b, compute_dtype=jnp.float32)
    y = linear_block_prepared(x, params_f32)
    jax.block_until_ready(y)
    assert y.shape == (batch, fcn)
    assert jnp.allclose(y, y_ref, atol=1e-5, rtol=1e-5)

    # Default path (bf16 MXU inputs on v6e/v7x, f32 accumulation) — loose tolerance.
    y_fast = linear_block(x, w, b)
    jax.block_until_ready(y_fast)
    assert y_fast.shape == (batch, fcn)
    assert jnp.allclose(y_fast, y_ref, atol=5e-2, rtol=5e-2)

    # --- second small shape to exercise the K-tiled accumulator kernel path ---
    batch2, fcn2 = 8, 256
    kx2, kw2, kb2 = jax.random.split(jax.random.PRNGKey(1), 3)
    x2 = jax.random.normal(kx2, (batch2, fcn2), dtype=jnp.float32)
    bound2 = 1.0 / (fcn2 ** 0.5)
    w2 = jax.random.uniform(kw2, (fcn2, fcn2), minval=-bound2, maxval=bound2,
                            dtype=jnp.float32)
    b2 = jax.random.uniform(kb2, (fcn2,), minval=-bound2, maxval=bound2,
                            dtype=jnp.float32)
    y2_ref = jnp.maximum(x2 @ w2 + b2, 0.0)

    y2 = linear_block(x2, w2, b2, compute_dtype=jnp.float32, tile_k=128)  # 2 K steps
    jax.block_until_ready(y2)
    assert y2.shape == (batch2, fcn2)
    assert jnp.allclose(y2, y2_ref, atol=1e-5, rtol=1e-5)

    print("KERNEL_OK")
</pallas_src>

<mosaic_0001>
module attributes {stable_mosaic.version = 11 : i64} {
  func.func @_linear_relu_kernel(%arg0: i32, %arg1: i32, %arg2: memref<16x128xf32, #tpu.memory_space<vmem>>, %arg3: memref<128x128xf32, #tpu.memory_space<vmem>>, %arg4: memref<1x128xf32, #tpu.memory_space<vmem>>, %arg5: memref<16x128xf32, #tpu.memory_space<vmem>>) attributes {dimension_semantics = [#tpu.dimension_semantics<parallel>, #tpu.dimension_semantics<parallel>], iteration_bounds = array<i64: 1, 1>, scalar_prefetch = 0 : i64, scratch_operands = 0 : i64, tpu.core_type = #tpu.core_type<tc>, window_params = [{transform_indices = @transform_0, window_bounds = array<i64: 16, 128>}, {transform_indices = @transform_1, window_bounds = array<i64: 128, 128>}, {transform_indices = @transform_2, window_bounds = array<i64: 1, 128>}, {transform_indices = @transform_3, window_bounds = array<i64: 16, 128>}]} {
    %c0 = arith.constant 0 : index
    %c0_0 = arith.constant 0 : index
    %0 = vector.load %arg2[%c0, %c0_0] : memref<16x128xf32, #tpu.memory_space<vmem>>, vector<16x128xf32>
    %c0_1 = arith.constant 0 : index
    %c0_2 = arith.constant 0 : index
    %1 = vector.load %arg3[%c0_1, %c0_2] : memref<128x128xf32, #tpu.memory_space<vmem>>, vector<128x128xf32>
    %cst = arith.constant dense<0.000000e+00> : vector<16x128xf32>
    %2 = tpu.matmul %0, %1, %cst {dimension_numbers = #tpu.dot_dimension_numbers<[1], [0], [0], [1], [0, 0, 1, 1], [], []>} : vector<16x128xf32>, vector<128x128xf32>, vector<16x128xf32> -> vector<16x128xf32>
    %c0_3 = arith.constant 0 : index
    %c0_4 = arith.constant 0 : index
    %3 = vector.load %arg4[%c0_3, %c0_4] : memref<1x128xf32, #tpu.memory_space<vmem>>, vector<1x128xf32>
    %4 = vector.broadcast %3 : vector<1x128xf32> to vector<16x128xf32>
    %5 = arith.addf %2, %4 : vector<16x128xf32>
    %cst_5 = arith.constant 0.000000e+00 : f32
    %6 = vector.broadcast %cst_5 : f32 to vector<16x128xf32>
    %7 = arith.maximumf %5, %6 : vector<16x128xf32>
    %c0_6 = arith.constant 0 : index
    %c0_7 = arith.constant 0 : index
    %8 = vector.load %arg5[%c0_6, %c0_7] : memref<16x128xf32, #tpu.memory_space<vmem>>, vector<16x128xf32>
    tpu.vector_store %arg5[%c0_6, %c0_7], %7 {strides = array<i32>} : memref<16x128xf32, #tpu.memory_space<vmem>>, vector<16x128xf32>,
    return
  }
  func.func @transform_0(%arg0: i32, %arg1: i32) -> (i32, i32) {
    %c0_i32 = arith.constant 0 : i32
    %c0_i32_0 = arith.constant 0 : i32
    return %arg0, %c0_i32 : i32, i32
  }
  func.func @transform_1(%arg0: i32, %arg1: i32) -> (i32, i32) {
    %c0_i32 = arith.constant 0 : i32
    %c0_i32_0 = arith.constant 0 : i32
    return %c0_i32, %arg1 : i32, i32
  }
  func.func @transform_2(%arg0: i32, %arg1: i32) -> (i32, i32) {
    %c0_i32 = arith.constant 0 : i32
    %c0_i32_0 = arith.constant 0 : i32
    return %c0_i32, %arg1 : i32, i32
  }
  func.func @transform_3(%arg0: i32, %arg1: i32) -> (i32, i32) {
    %c0_i32 = arith.constant 0 : i32
    return %arg0, %arg1 : i32, i32
  }
}

</mosaic_0001>

<bundles_post_ra>
// kernel: tpu_custom_call.1
= control target key start
LH: loop header
LB: loop body
LE: loop exit
PB: predicated region body
PF: predicated region fallthrough
CT: control target
= control target key end

     0   :  { %8 = vsyncpa [#allocation3], 0  ;;  %s401_s0 = inlined_call_operand.hbm [shape: f32[16,128], index: 0, kind: input, shape index: {}]   ;;  %s402_s1 = inlined_call_operand.hbm [shape: f32[128,128], index: 1, kind: input, shape index: {}]   ;;  %s403_s2 = inlined_call_operand.vmem [shape: f32[1,128], index: 2, kind: input, shape index: {}]   ;;  %s404_s3 = inlined_call_operand.hbm [shape: f32[16,128], index: 3, kind: output, shape index: {}]  }
   0x1   :  { %9 = vsyncpa [#allocation6], 0 }
   0x2   :  { %10 = vsyncpa [#allocation4], 0  ;;  %s328_s12 = smov [#allocation2]   ;;  %s256_s16 = scalar_lea.hbm %s401_s0, 256 }
   0x3   :  { %s16_s13 = sshll.u32 %s328_s12, 4  ;;  %p257_p0 = scmp.ne.s32.totalorder %s401_s0, %s256_s16  ;;  %s17_s13 = int_to_ptr.vmem [resolvable:$true] %s16_s13 }
   0x4   :  { %p260_p1 = scmp.lt.u32.totalorder %s256_s16, %s401_s0 }
   0x6   :  { %p262_p2 = pnand %p260_p1, %p257_p0 }
   0x8   :  { %265 = shalt.err (!%p262_p2)
}
   0x9   :  { %s266_s21 = scalar_lea.vmem %s17_s13, 256  ;;  %p271_p4 = scmp.lt.s32.totalorder %s17_s13, %s17_s13 }
   0xa   :  { %p267_p3 = scmp.ne.s32.totalorder %s17_s13, %s266_s21  ;;  %p272_p5 = scmp.lt.s32.totalorder %s266_s21, %s266_s21 }
   0xc   :  { %p273_p6 = por %p272_p5, %p271_p4 }
   0xe   :  { %p274_p7 = pnand %p273_p6, %p267_p3 }
  0x10   :  { %277 = shalt.err (!%p274_p7)
}
  0x11   :  { %s329_s22 = smov 128   ;;  %s330_s23 = smov 8  }
  0x12   :  { %22 = dma.hbm_to_vmem [thread:$0]  %s401_s0, 256, %s17_s13, [#allocation3], %s329_s22, %s329_s22, %s330_s23  }
  0x13   :  { %s331_s26 = smov [#allocation5]   ;;  %s278_s30 = scalar_lea.hbm %s402_s1, 2048 }
  0x14   :  { %s28_s27 = sshll.u32 %s331_s26, 4  ;;  %p279_p8 = scmp.ne.s32.totalorder %s402_s1, %s278_s30  ;;  %s29_s27 = int_to_ptr.vmem [resolvable:$true] %s28_s27 }
  0x15   :  { %p282_p9 = scmp.lt.u32.totalorder %s278_s30, %s402_s1 }
  0x17   :  { %p284_p10 = pnand %p282_p9, %p279_p8 }
  0x19   :  { %287 = shalt.err (!%p284_p10)
}
  0x1a   :  { %s288_s8 = scalar_lea.vmem %s29_s27, 2048  ;;  %p293_p12 = scmp.lt.s32.totalorder %s29_s27, %s29_s27 }
  0x1b   :  { %p289_p11 = scmp.ne.s32.totalorder %s29_s27, %s288_s8  ;;  %p294_p13 = scmp.lt.s32.totalorder %s288_s8, %s288_s8 }
  0x1d   :  { %p295_p0 = por %p294_p13, %p293_p12 }
  0x1f   :  { %p296_p1 = pnand %p295_p0, %p289_p11 }
  0x21   :  { %299 = shalt.err (!%p296_p1)
}
  0x22   :  { %34 = dma.hbm_to_vmem [thread:$0]  %s402_s1, 2048, %s29_s27, [#allocation6], %s329_s22, %s329_s22, %s330_s23  }
  0x23   :  { %322 = dma.done.wait [#allocation3], 256  }
  0x24   :  { %323 = vsyncadd [#allocation3], 4294967040 }
  0x25   :  { %324 = dma.done.wait [#allocation6], 2048  }
  0x26   :  { %325 = vsyncadd [#allocation6], 4294965248  ;;  %v45_v0 = vld [vmem:[#allocation5] sm:$0xff]  ;;  %v46_v1 = vld [vmem:[#allocation5 + $0x8] sm:$0xff]  ;;  %s332_s11 = smov [#allocation7]  }
  0x27   :  { %v47_v2 = vld [vmem:[#allocation5 + $0x10] sm:$0xff]  ;;  %v219_v3 = vpack.c.bf16 %v46_v1, %v45_v0  ;;  %v48_v4 = vld [vmem:[#allocation5 + $0x18] sm:$0xff]  ;;  %v49_v6 = vld [vmem:[#allocation5 + $0x20] sm:$0xff]  ;;  %s152_s12 = sshll.u32 %s332_s11, 4  ;;  %s153_s12 = int_to_ptr.vmem [resolvable:$true] %s152_s12 }
  0x28   :  { %v223_v5 = vpack.c.bf16 %v48_v4, %v47_v2  ;;  %v50_v7 = vld [vmem:[#allocation5 + $0x28] sm:$0xff]  ;;  %v43_v9 = vld [vmem:[#allocation2] sm:$0xff]  ;;  %v52_v11 = vld [vmem:[#allocation5 + $0x38] sm:$0xff]  ;;  %s300_s13 = scalar_lea.vmem %s153_s12, 256  ;;  %p305_p3 = scmp.lt.s32.totalorder %s153_s12, %s153_s12 }
  0x29   :  { %220 = vmatprep.subr.bf16.mxu0 %v219_v3  ;;  %v227_v8 = vpack.c.bf16 %v50_v7, %v49_v6  ;;  %v51_v10 = vld [vmem:[#allocation5 + $0x30] sm:$0xff]  ;;  %216 = vmatprep.mubr.f32.mxu0 %v43_v9  ;;  %v53_v13 = vld [vmem:[#allocation5 + $0x40] sm:$0xff]  ;;  %v54_v14 = vld [vmem:[#allocation5 + $0x48] sm:$0xff]  ;;  %p301_p2 = scmp.ne.s32.totalorder %s153_s12, %s300_s13  ;;  %p306_p4 = scmp.lt.s32.totalorder %s300_s13, %s300_s13 }
  0x2a   :  { %222 = vmatpush3.bf16.msra.mxu0 %v219_v3  ;;  %v231_v12 = vpack.c.bf16 %v52_v11, %v51_v10  ;;  %v235_v15 = vpack.c.bf16 %v54_v14, %v53_v13  ;;  %v55_v16 = vld [vmem:[#allocation5 + $0x50] sm:$0xff]  ;;  %v56_v17 = vld [vmem:[#allocation5 + $0x58] sm:$0xff]  ;;  %v57_v19 = vld [vmem:[#allocation5 + $0x60] sm:$0xff] }
  0x2b   :  { %224 = vmatprep.subr.bf16.mxu0 %v223_v5  ;;  %v239_v18 = vpack.c.bf16 %v56_v17, %v55_v16  ;;  %v58_v20 = vld [vmem:[#allocation5 + $0x68] sm:$0xff]  ;;  %v59_v22 = vld [vmem:[#allocation5 + $0x70] sm:$0xff]  ;;  %v60_v23 = vld [vmem:[#allocation5 + $0x78] sm:$0xff]  ;;  %p307_p5 = por %p306_p4, %p305_p3 }
  0x2c   :  { %v243_v21 = vpack.c.bf16 %v58_v20, %v57_v19  ;;  %v247_v24 = vpack.c.bf16 %v60_v23, %v59_v22  ;;  %v44_v25 = vld [vmem:[#allocation2 + $0x8] sm:$0xff]  ;;  %v165_v26 = vld [vmem:[%s403_s2] ss:$0 sm:$0xff] }
  0x2d   :  { %p308_p6 = pnand %p307_p5, %p301_p2 }
  0x2e   :  { %226 = vmatpush3.bf16.msra.mxu0 %v223_v5 }
  0x2f   :  { %228 = vmatprep.subr.bf16.mxu0 %v227_v8 }
  0x32   :  { %230 = vmatpush3.bf16.msra.mxu0 %v227_v8 }
  0x33   :  { %232 = vmatprep.subr.bf16.mxu0 %v231_v12 }
  0x36   :  { %234 = vmatpush3.bf16.msra.mxu0 %v231_v12 }
  0x37   :  { %236 = vmatprep.subr.bf16.mxu0 %v235_v15 }
  0x3a   :  { %238 = vmatpush3.bf16.msra.mxu0 %v235_v15 }
  0x3b   :  { %240 = vmatprep.subr.bf16.mxu0 %v239_v18 }
  0x3e   :  { %242 = vmatpush3.bf16.msra.mxu0 %v239_v18 }
  0x3f   :  { %244 = vmatprep.subr.bf16.mxu0 %v243_v21 }
  0x42   :  { %246 = vmatpush3.bf16.msra.mxu0 %v243_v21 }
  0x43   :  { %248 = vmatprep.subr.bf16.mxu0 %v247_v24 }
  0x46   :  { %250 = vmatpush3.bf16.msra.mxu0 %v247_v24 }
  0x49   :  { %217 = vmatmul.mubr.f32.vlgmr.msra.gmra.mrb[0].mxu0 %v44_v25 }
 0x11c   :  { %v218_v27 = vpop.f32.mrb[0].mxu0 }
 0x11d   :  { %v140_v28 = vadd.f32 %v218_v27, %v165_v26  ;;  %v134_v29 = vpop.f32.mrb[1].mxu0 }
 0x11e   :  { %v135_v30 = vadd.f32 %v165_v26, %v134_v29 }
 0x11f   :  { %v144_v31 = vmax.f32 %v140_v28, 0.0 }
 0x120   :  { %v143_v32 = vmax.f32 %v135_v30, 0.0 }
 0x121   :  { %146 = vst [vmem:[#allocation7 + $0x8] sm:$0xff] %v144_v31 }
 0x122   :  { %145 = vst [vmem:[#allocation7] sm:$0xff] %v143_v32 }
 0x123   :  { %311 = shalt.err (!%p308_p6)
}
 0x124   :  { %s312_s15 = scalar_lea.hbm %s404_s3, 256 }
 0x125   :  { %p313_p7 = scmp.ne.s32.totalorder %s404_s3, %s312_s15  ;;  %p316_p8 = scmp.lt.u32.totalorder %s312_s15, %s404_s3 }
 0x127   :  { %p318_p9 = pnand %p316_p8, %p313_p7 }
 0x129   :  { %321 = shalt.err (!%p318_p9)
}
 0x12a   :  { %158 = dma.vmem_to_hbm [thread:$0]  %s153_s12, 256, %s404_s3, [#allocation4], %s329_s22, %s329_s22, %s330_s23  }
 0x12b   :  { %326 = dma.done.wait [#allocation4], 256  }
 0x12c   :  { %327 = vsyncadd [#allocation4], 4294967040 }
 0x12d   :  { %162 = vsyncpa [#allocation3], 1 }
 0x12e   :  { %163 = vsyncpa [#allocation6], 1 }
 0x12f   :  { %164 = vsyncpa [#allocation4], 1 }

</bundles_post_ra>
